<compile_context>
chip_gen: v7x
topology: tpu7x:2x2x1
jax: 0.10.0
libtpu: 0.0.40
codegen_flags: <defaults>
</compile_context>

<pallas_src>
import jax
import jax.numpy as jnp
from jax.experimental import pallas as pl
from jax.experimental.pallas import tpu as pltpu


def _round_up(x, m):
    return (x + m - 1) // m * m


def mlp_kernel(xT_ref, w1_ref, b1_ref, w2_ref, b2_ref, w3_ref, b3_ref, oT_ref):
    # One batch tile (features-major). All weights/biases are VMEM-resident.
    xT = xT_ref[...]                                                   # (8, TB)
    h1 = jnp.dot(w1_ref[...], xT, preferred_element_type=jnp.float32) + b1_ref[...]
    h1 = jnp.maximum(h1, 0.0)                                          # (64, TB)
    h2 = jnp.dot(w2_ref[...], h1, preferred_element_type=jnp.float32) + b2_ref[...]
    h2 = jnp.maximum(h2, 0.0)                                          # (128, TB)
    # Lane-dense (8, TB) store; rows >= 3 come from zero-padded w3/b3.
    oT_ref[...] = (
        jnp.dot(w3_ref[...], h2, preferred_element_type=jnp.float32) + b3_ref[...]
    ).astype(oT_ref.dtype)


@jax.jit
def net_forward(x, packed_params):
    """x: (B, 4) f32 -> logits (B, 3) f32."""
    w1_t, b1_c, w2_t, b2_c, w3_t, b3_c = packed_params
    B, K = x.shape
    K_PAD = w1_t.shape[1]                      # 8
    N_PAD = w3_t.shape[0]                      # 8 (real logits = 3)

    # Batch tile: multiple of 128 (lane-dense output), capped at 1024, and
    # sized from cdiv(B, 2) so larger batches get an even tile count (both
    # v7x TensorCores busy). Per-step VMEM stays < 1 MB.
    TB = min(1024, _round_up(pl.cdiv(B, 2), 128))
    B_pad = _round_up(B, TB)
    n_tiles = B_pad // TB

    # Single pad (batch + feature) then transpose; fused under jit.
    xT = jnp.pad(x, ((0, B_pad - B), (0, K_PAD - K))).T    # (8, B_pad)

    def const_spec(arr):
        nd = arr.ndim
        return pl.BlockSpec(arr.shape, lambda i: (0,) * nd)

    out_t = pl.pallas_call(
        mlp_kernel,
        out_shape=jax.ShapeDtypeStruct((N_PAD, B_pad), jnp.float32),
        grid=(n_tiles,),
        in_specs=[
            pl.BlockSpec((K_PAD, TB), lambda i: (0, i)),   # x^T: tiled over batch
            const_spec(w1_t), const_spec(b1_c),            # weights: VMEM-resident
            const_spec(w2_t), const_spec(b2_c),
            const_spec(w3_t), const_spec(b3_c),
        ],
        out_specs=pl.BlockSpec((N_PAD, TB), lambda i: (0, i)),
        compiler_params=pltpu.CompilerParams(
            dimension_semantics=("parallel",),             # megacore on v7x
        ),
    )(xT, w1_t, b1_c, w2_t, b2_c, w3_t, b3_c)

    # Drop padded logit rows / batch columns, back to (B, 3).
    return out_t[:3, :B].T


def init_params(key):
    # Mimic PyTorch nn.Linear default init: U(-1/sqrt(fan_in), 1/sqrt(fan_in)),
    # deterministic via jax.random (synthetic weights, no checkpoint load).
    # Math layout: w (in, out), b (1, out).
    def linear(key, fan_in, fan_out):
        kw, kb = jax.random.split(key)
        bound = 1.0 / jnp.sqrt(fan_in)
        w = jax.random.uniform(kw, (fan_in, fan_out), jnp.float32, -bound, bound)
        b = jax.random.uniform(kb, (1, fan_out), jnp.float32, -bound, bound)
        return w, b

    k1, k2, k3 = jax.random.split(key, 3)
    w1, b1 = linear(k1, 4, 64)
    w2, b2 = linear(k2, 64, 128)
    w3, b3 = linear(k3, 128, 3)
    return w1, b1, w2, b2, w3, b3


def pack_params(params):
    """One-time repack into the kernel layout: transposed weights, padded
    fc1 contraction dim (4 -> 8) and fc3 output dim (3 -> 8), column biases."""
    w1, b1, w2, b2, w3, b3 = params
    K_PAD, N_PAD = 8, 8
    w1_t = jnp.pad(w1, ((0, K_PAD - w1.shape[0]), (0, 0))).T        # (64, 8)
    w2_t = w2.T                                                     # (128, 64)
    w3_t = jnp.pad(w3, ((0, 0), (0, N_PAD - w3.shape[1]))).T        # (8, 128)
    b1_c = b1.T                                                     # (64, 1)
    b2_c = b2.T                                                     # (128, 1)
    b3_c = jnp.pad(b3, ((0, 0), (0, N_PAD - b3.shape[1]))).T        # (8, 1)
    return w1_t, b1_c, w2_t, b2_c, w3_t, b3_c


def reference_forward(x, params):
    w1, b1, w2, b2, w3, b3 = params
    h1 = jnp.maximum(x @ w1 + b1, 0.0)
    h2 = jnp.maximum(h1 @ w2 + b2, 0.0)
    return h2 @ w3 + b3


if __name__ == "__main__":
    key = jax.random.PRNGKey(0)
    kx, kp = jax.random.split(key)
    params = init_params(kp)
    packed = pack_params(params)

    # Iris-style input: batch of 8 samples, 4 features each.
    x = jax.random.normal(kx, (8, 4), dtype=jnp.float32)
    out = jax.block_until_ready(net_forward(x, packed))
    ref = reference_forward(x, params)
    assert out.shape == (8, 3)
    assert jnp.allclose(out, ref, atol=1e-5, rtol=1e-5)

    # Also exercise the multi-tile path (padded batch, 2 grid steps).
    xb = jax.random.normal(kx, (600, 4), dtype=jnp.float32)
    outb = jax.block_until_ready(net_forward(xb, packed))
    refb = reference_forward(xb, params)
    assert outb.shape == (600, 3)
    assert jnp.allclose(outb, refb, atol=1e-4, rtol=1e-4)

    print("KERNEL_OK")
</pallas_src>

<mosaic_0001>
module attributes {stable_mosaic.version = 11 : i64} {
  func.func @mlp_kernel(%arg0: i32, %arg1: memref<8x128xf32, #tpu.memory_space<vmem>>, %arg2: memref<64x8xf32, #tpu.memory_space<vmem>>, %arg3: memref<64x1xf32, #tpu.memory_space<vmem>>, %arg4: memref<128x64xf32, #tpu.memory_space<vmem>>, %arg5: memref<128x1xf32, #tpu.memory_space<vmem>>, %arg6: memref<8x128xf32, #tpu.memory_space<vmem>>, %arg7: memref<8x1xf32, #tpu.memory_space<vmem>>, %arg8: memref<8x128xf32, #tpu.memory_space<vmem>>) attributes {dimension_semantics = [#tpu.dimension_semantics<parallel>], iteration_bounds = array<i64: 1>, scalar_prefetch = 0 : i64, scratch_operands = 0 : i64, tpu.core_type = #tpu.core_type<tc>, window_params = [{transform_indices = @transform_0, window_bounds = array<i64: 8, 128>}, {pipeline_mode = #tpu.pipeline_mode<synchronous>, transform_indices = @transform_1, window_bounds = array<i64: 64, 8>}, {pipeline_mode = #tpu.pipeline_mode<synchronous>, transform_indices = @transform_2, window_bounds = array<i64: 64, 1>}, {pipeline_mode = #tpu.pipeline_mode<synchronous>, transform_indices = @transform_3, window_bounds = array<i64: 128, 64>}, {pipeline_mode = #tpu.pipeline_mode<synchronous>, transform_indices = @transform_4, window_bounds = array<i64: 128, 1>}, {pipeline_mode = #tpu.pipeline_mode<synchronous>, transform_indices = @transform_5, window_bounds = array<i64: 8, 128>}, {pipeline_mode = #tpu.pipeline_mode<synchronous>, transform_indices = @transform_6, window_bounds = array<i64: 8, 1>}, {transform_indices = @transform_7, window_bounds = array<i64: 8, 128>}]} {
    %c0 = arith.constant 0 : index
    %c0_0 = arith.constant 0 : index
    %0 = vector.load %arg1[%c0, %c0_0] : memref<8x128xf32, #tpu.memory_space<vmem>>, vector<8x128xf32>
    %c0_1 = arith.constant 0 : index
    %c0_2 = arith.constant 0 : index
    %1 = vector.load %arg2[%c0_1, %c0_2] : memref<64x8xf32, #tpu.memory_space<vmem>>, vector<64x8xf32>
    %cst = arith.constant dense<0.000000e+00> : vector<64x128xf32>
    %2 = tpu.matmul %1, %0, %cst {dimension_numbers = #tpu.dot_dimension_numbers<[1], [0], [0], [1], [0, 0, 1, 1], [], []>} : vector<64x8xf32>, vector<8x128xf32>, vector<64x128xf32> -> vector<64x128xf32>
    %c0_3 = arith.constant 0 : index
    %c0_4 = arith.constant 0 : index
    %3 = vector.load %arg3[%c0_3, %c0_4] : memref<64x1xf32, #tpu.memory_space<vmem>>, vector<64x1xf32>
    %4 = vector.broadcast %3 : vector<64x1xf32> to vector<64x128xf32>
    %5 = arith.addf %2, %4 : vector<64x128xf32>
    %cst_5 = arith.constant 0.000000e+00 : f32
    %6 = vector.broadcast %cst_5 : f32 to vector<64x128xf32>
    %7 = arith.maximumf %5, %6 : vector<64x128xf32>
    %c0_6 = arith.constant 0 : index
    %c0_7 = arith.constant 0 : index
    %8 = vector.load %arg4[%c0_6, %c0_7] : memref<128x64xf32, #tpu.memory_space<vmem>>, vector<128x64xf32>
    %cst_8 = arith.constant dense<0.000000e+00> : vector<128x128xf32>
    %9 = tpu.matmul %8, %7, %cst_8 {dimension_numbers = #tpu.dot_dimension_numbers<[1], [0], [0], [1], [0, 0, 1, 1], [], []>} : vector<128x64xf32>, vector<64x128xf32>, vector<128x128xf32> -> vector<128x128xf32>
    %c0_9 = arith.constant 0 : index
    %c0_10 = arith.constant 0 : index
    %10 = vector.load %arg5[%c0_9, %c0_10] : memref<128x1xf32, #tpu.memory_space<vmem>>, vector<128x1xf32>
    %11 = vector.broadcast %10 : vector<128x1xf32> to vector<128x128xf32>
    %12 = arith.addf %9, %11 : vector<128x128xf32>
    %cst_11 = arith.constant 0.000000e+00 : f32
    %13 = vector.broadcast %cst_11 : f32 to vector<128x128xf32>
    %14 = arith.maximumf %12, %13 : vector<128x128xf32>
    %c0_12 = arith.constant 0 : index
    %c0_13 = arith.constant 0 : index
    %15 = vector.load %arg6[%c0_12, %c0_13] : memref<8x128xf32, #tpu.memory_space<vmem>>, vector<8x128xf32>
    %cst_14 = arith.constant dense<0.000000e+00> : vector<8x128xf32>
    %16 = tpu.matmul %15, %14, %cst_14 {dimension_numbers = #tpu.dot_dimension_numbers<[1], [0], [0], [1], [0, 0, 1, 1], [], []>} : vector<8x128xf32>, vector<128x128xf32>, vector<8x128xf32> -> vector<8x128xf32>
    %c0_15 = arith.constant 0 : index
    %c0_16 = arith.constant 0 : index
    %17 = vector.load %arg7[%c0_15, %c0_16] : memref<8x1xf32, #tpu.memory_space<vmem>>, vector<8x1xf32>
    %18 = vector.broadcast %17 : vector<8x1xf32> to vector<8x128xf32>
    %19 = arith.addf %16, %18 : vector<8x128xf32>
    %c0_17 = arith.constant 0 : index
    %c0_18 = arith.constant 0 : index
    %20 = vector.load %arg8[%c0_17, %c0_18] : memref<8x128xf32, #tpu.memory_space<vmem>>, vector<8x128xf32>
    tpu.vector_store %arg8[%c0_17, %c0_18], %19 {strides = array<i32>} : memref<8x128xf32, #tpu.memory_space<vmem>>, vector<8x128xf32>,
    return
  }
  func.func @transform_0(%arg0: i32) -> (i32, i32) {
    %c0_i32 = arith.constant 0 : i32
    %c0_i32_0 = arith.constant 0 : i32
    return %c0_i32, %arg0 : i32, i32
  }
  func.func @transform_1(%arg0: i32) -> (i32, i32) {
    %c0_i32 = arith.constant 0 : i32
    %c0_i32_0 = arith.constant 0 : i32
    %c0_i32_1 = arith.constant 0 : i32
    return %c0_i32, %c0_i32_0 : i32, i32
  }
  func.func @transform_2(%arg0: i32) -> (i32, i32) {
    %c0_i32 = arith.constant 0 : i32
    %c0_i32_0 = arith.constant 0 : i32
    %c0_i32_1 = arith.constant 0 : i32
    return %c0_i32, %c0_i32_0 : i32, i32
  }
  func.func @transform_3(%arg0: i32) -> (i32, i32) {
    %c0_i32 = arith.constant 0 : i32
    %c0_i32_0 = arith.constant 0 : i32
    %c0_i32_1 = arith.constant 0 : i32
    return %c0_i32, %c0_i32_0 : i32, i32
  }
  func.func @transform_4(%arg0: i32) -> (i32, i32) {
    %c0_i32 = arith.constant 0 : i32
    %c0_i32_0 = arith.constant 0 : i32
    %c0_i32_1 = arith.constant 0 : i32
    return %c0_i32, %c0_i32_0 : i32, i32
  }
  func.func @transform_5(%arg0: i32) -> (i32, i32) {
    %c0_i32 = arith.constant 0 : i32
    %c0_i32_0 = arith.constant 0 : i32
    %c0_i32_1 = arith.constant 0 : i32
    return %c0_i32, %c0_i32_0 : i32, i32
  }
  func.func @transform_6(%arg0: i32) -> (i32, i32) {
    %c0_i32 = arith.constant 0 : i32
    %c0_i32_0 = arith.constant 0 : i32
    %c0_i32_1 = arith.constant 0 : i32
    return %c0_i32, %c0_i32_0 : i32, i32
  }
  func.func @transform_7(%arg0: i32) -> (i32, i32) {
    %c0_i32 = arith.constant 0 : i32
    %c0_i32_0 = arith.constant 0 : i32
    return %c0_i32, %arg0 : i32, i32
  }
}

</mosaic_0001>

<bundles_post_ra>
// kernel: net_forward.1
= control target key start
LH: loop header
LB: loop body
LE: loop exit
PB: predicated region body
PF: predicated region fallthrough
CT: control target
= control target key end

     0   :  { %vm83_vm0 = vcmask 64512   ;;  %v834_v3 = vmov 0   ;;  %vm333_vm1 = vcmask 523264   ;;  %vm836_vm2 = vmmov 0   ;;  %s1066_s0 = inlined_call_operand.vmem [shape: f32[8,128], index: 0, kind: input, shape index: {}]   ;;  %s1067_s1 = inlined_call_operand.vmem [shape: f32[64,8], index: 1, kind: input, shape index: {}]   ;;  %s1068_s2 = inlined_call_operand.vmem [shape: f32[64,1], index: 2, kind: input, shape index: {}]   ;;  %s1069_s4 = inlined_call_operand.vmem [shape: f32[128,1], index: 4, kind: input, shape index: {}]   ;;  %s1070_s6 = inlined_call_operand.vmem [shape: f32[8,1], index: 6, kind: input, shape index: {}]   ;;  %s1071_s3 = inlined_call_operand.vmem [shape: f32[128,64], index: 3, kind: input, shape index: {}]   ;;  %s1072_s5 = inlined_call_operand.vmem [shape: f32[8,128], index: 5, kind: input, shape index: {}]   ;;  %s1073_s7 = inlined_call_operand.vmem [shape: f32[8,128], index: 7, kind: output, shape index: {}]  }
   0x1   :  { %v26_v0 = vld [vmem:[%s1066_s0] sm:$0xff]  ;;  %v28_v2 = vld [vmem:[%s1067_s1 + $0x8] sm:$0xff]  ;;  %832 = vset.pattern.permute.xlu0 %v834_v3  ;;  %833 = vset.pattern.permute.xlu1 %v834_v3  ;;  %v29_v4 = vld [vmem:[%s1067_s1 + $0x10] sm:$0xff] }
   0x2   :  { %v27_v1 = vld [vmem:[%s1067_s1] sm:$0xff]  ;;  %699 = vmatprep.subr.mxu0 %v26_v0  ;;  %v37_v6 = vld [vmem:[%s1068_s2 + $0x10] sm:$0xff]  ;;  %v30_v7 = vld [vmem:[%s1067_s1 + $0x18] sm:$0xff] }
   0x3   :  { %701 = vmatprep.mubr.msk.f32.mxu0 %vm83_vm0, %v27_v1  ;;  %700 = vmatpush3.msra.mxu0 %v26_v0  ;;  %v35_v5 = vld [vmem:[%s1068_s2] sm:$0xff]  ;;  %v36_v9 = vld [vmem:[%s1068_s2 + $0x8] sm:$0xff]  ;;  %v38_v10 = vld [vmem:[%s1068_s2 + $0x18] sm:$0xff] }
   0x4   :  { %702 = vmatmul.mubr.msk.f32.vlgmr.msra.gmra.mrb[0].mxu0 %vm83_vm0, %v28_v2  ;;  %45 = vperm.xlu0 %832, %v35_v5   ;;  %v31_v8 = vld [vmem:[%s1067_s1 + $0x20] sm:$0xff]  ;;  %v32_v11 = vld [vmem:[%s1067_s1 + $0x28] sm:$0xff]  ;;  %v33_v12 = vld [vmem:[%s1067_s1 + $0x30] sm:$0xff] }
   0x5   :  { %704 = vmatprep.mubr.msk.f32.mxu0 %vm83_vm0, %v29_v4  ;;  %55 = vperm.xlu1 %833, %v37_v6   ;;  %v39_v13 = vld [vmem:[%s1068_s2 + $0x20] sm:$0xff]  ;;  %v40_v14 = vld [vmem:[%s1068_s2 + $0x28] sm:$0xff]  ;;  %v34_v15 = vld [vmem:[%s1067_s1 + $0x38] sm:$0xff] }
   0x6   :  { %v41_v16 = vld [vmem:[%s1068_s2 + $0x30] sm:$0xff]  ;;  %v42_v17 = vld [vmem:[%s1068_s2 + $0x38] sm:$0xff]  ;;  %v237_v18 = vld [vmem:[%s1069_s4] sm:$0xff] }
   0x7   :  { %v238_v19 = vld [vmem:[%s1069_s4 + $0x8] sm:$0xff]  ;;  %v239_v20 = vld [vmem:[%s1069_s4 + $0x10] sm:$0xff]  ;;  %v240_v21 = vld [vmem:[%s1069_s4 + $0x18] sm:$0xff] }
   0x8   :  { %705 = vmatmul.mubr.msk.f32.gmra.mrb[2].mxu0 %vm83_vm0, %v30_v7  ;;  %50 = vperm.xlu0 %832, %v36_v9   ;;  %v241_v22 = vld [vmem:[%s1069_s4 + $0x20] sm:$0xff]  ;;  %v242_v23 = vld [vmem:[%s1069_s4 + $0x28] sm:$0xff]  ;;  %v243_v24 = vld [vmem:[%s1069_s4 + $0x30] sm:$0xff] }
   0x9   :  { %707 = vmatprep.mubr.msk.f32.mxu0 %vm83_vm0, %v31_v8  ;;  %60 = vperm.xlu1 %833, %v38_v10   ;;  %v244_v25 = vld [vmem:[%s1069_s4 + $0x38] sm:$0xff]  ;;  %v245_v26 = vld [vmem:[%s1069_s4 + $0x40] sm:$0xff]  ;;  %v246_v27 = vld [vmem:[%s1069_s4 + $0x48] sm:$0xff] }
   0xa   :  { %v247_v28 = vld [vmem:[%s1069_s4 + $0x50] sm:$0xff]  ;;  %v248_v29 = vld [vmem:[%s1069_s4 + $0x58] sm:$0xff]  ;;  %v249_v30 = vld [vmem:[%s1069_s4 + $0x60] sm:$0xff] }
   0xb   :  { %v250_v31 = vld [vmem:[%s1069_s4 + $0x68] sm:$0xff]  ;;  %v251_v32 = vld [vmem:[%s1069_s4 + $0x70] sm:$0xff]  ;;  %v252_v33 = vld [vmem:[%s1069_s4 + $0x78] sm:$0xff] }
   0xc   :  { %708 = vmatmul.mubr.msk.f32.gmra.mrb[4].mxu0 %vm83_vm0, %v32_v11  ;;  %65 = vperm.xlu0 %832, %v39_v13   ;;  %v544_v34 = vld [vmem:[%s1070_s6] sm:$0xff]  ;;  %v222_v8 = vld [vmem:[%s1071_s3 + $0x8] sm:$0xff]  ;;  %v223_v9 = vld [vmem:[%s1071_s3 + $0x10] sm:$0xff] }
   0xd   :  { %710 = vmatprep.mubr.msk.f32.mxu0 %vm83_vm0, %v33_v12  ;;  %70 = vperm.xlu1 %833, %v40_v14   ;;  %v221_v35 = vld [vmem:[%s1071_s3] sm:$0xff]  ;;  %v224_v10 = vld [vmem:[%s1071_s3 + $0x18] sm:$0xff]  ;;  %v226_v12 = vld [vmem:[%s1071_s3 + $0x28] sm:$0xff] }
   0xe   :  { %729 = vmatprep.mubr.msk.f32.mxu1 %vm333_vm1, %v221_v35  ;;  %v225_v11 = vld [vmem:[%s1071_s3 + $0x20] sm:$0xff]  ;;  %v227_v13 = vld [vmem:[%s1071_s3 + $0x30] sm:$0xff]  ;;  %v228_v14 = vld [vmem:[%s1071_s3 + $0x38] sm:$0xff] }
  0x10   :  { %711 = vmatmul.mubr.msk.f32.gmra.mrb[6].mxu0 %vm83_vm0, %v34_v15  ;;  %75 = vperm.xlu0 %832, %v41_v16   ;;  %v229_v15 = vld [vmem:[%s1071_s3 + $0x40] sm:$0xff]  ;;  %v230_v16 = vld [vmem:[%s1071_s3 + $0x48] sm:$0xff] }
  0x11   :  { %80 = vperm.xlu1 %833, %v42_v17   ;;  %v231_v17 = vld [vmem:[%s1071_s3 + $0x50] sm:$0xff] }
  0x14   :  { %255 = vperm.xlu0 %832, %v237_v18   ;;  %v232_v18 = vld [vmem:[%s1071_s3 + $0x58] sm:$0xff] }
  0x15   :  { %260 = vperm.xlu1 %833, %v238_v19   ;;  %v233_v19 = vld [vmem:[%s1071_s3 + $0x60] sm:$0xff] }
  0x18   :  { %265 = vperm.xlu0 %832, %v239_v20   ;;  %v234_v20 = vld [vmem:[%s1071_s3 + $0x68] sm:$0xff] }
  0x19   :  { %270 = vperm.xlu1 %833, %v240_v21   ;;  %v235_v21 = vld [vmem:[%s1071_s3 + $0x70] sm:$0xff] }
  0x1c   :  { %275 = vperm.xlu0 %832, %v241_v22   ;;  %v236_v22 = vld [vmem:[%s1071_s3 + $0x78] sm:$0xff] }
  0x1d   :  { %280 = vperm.xlu1 %833, %v242_v23   ;;  %v835_v23 = vmov 0.0|0.0  }
  0x1e   :  { %804 = vmatprep.subr.bf16.mxu0 %v835_v23 }
  0x20   :  { %285 = vperm.xlu0 %832, %v243_v24   ;;  %v837_v24 = vmov 0.0  }
  0x21   :  { %290 = vperm.xlu1 %833, %v244_v25   ;;  %785 = vmatprep.mubr.msk.f32.mxu0 %vm836_vm2, %v837_v24 }
  0x24   :  { %295 = vperm.xlu0 %832, %v245_v26  }
  0x25   :  { %300 = vperm.xlu1 %833, %v246_v27  }
  0x28   :  { %305 = vperm.xlu0 %832, %v247_v28  }
  0x29   :  { %310 = vperm.xlu1 %833, %v248_v29  }
  0x2c   :  { %315 = vperm.xlu0 %832, %v249_v30  }
  0x2d   :  { %320 = vperm.xlu1 %833, %v250_v31  }
  0x30   :  { %325 = vperm.xlu0 %832, %v251_v32  }
  0x31   :  { %330 = vperm.xlu1 %833, %v252_v33  }
  0x34   :  { %547 = vperm.xlu0 %832, %v544_v34  }
  0x83   :  { %v46_v36 = vpop.permute.xlu0 %45 }
  0x84   :  { %v56_v37 = vpop.permute.xlu1 %55 }
  0x87   :  { %v51_v38 = vpop.permute.xlu0 %50 }
  0x88   :  { %v61_v39 = vpop.permute.xlu1 %60 }
  0x8b   :  { %v66_v52 = vpop.permute.xlu0 %65 }
  0x8c   :  { %v71_v49 = vpop.permute.xlu1 %70 }
  0x8f   :  { %v76_v0 = vpop.permute.xlu0 %75 }
  0x90   :  { %v81_v61 = vpop.permute.xlu1 %80 }
  0x93   :  { %v256_v26 = vpop.permute.xlu0 %255 }
  0x94   :  { %v261_v25 = vpop.permute.xlu1 %260 }
  0x97   :  { %v266_v28 = vpop.permute.xlu0 %265 }
  0x98   :  { %v271_v27 = vpop.permute.xlu1 %270 }
  0x9b   :  { %v276_v30 = vpop.permute.xlu0 %275 }
  0x9c   :  { %v281_v29 = vpop.permute.xlu1 %280 }
  0xd7   :  { %v703_v40 = vpop.f32.mrb[0].mxu0 }
  0xd8   :  { %v180_v41 = vadd.f32 %v703_v40, %v51_v38  ;;  %v174_v42 = vpop.f32.mrb[1].mxu0 }
  0xd9   :  { %v175_v43 = vadd.f32 %v174_v42, %v46_v36  ;;  %v291_v36 = vpop.permute.xlu1 %290 }
  0xda   :  { %v214_v44 = vmax.f32 %v180_v41, 0.0 }
  0xdb   :  { %v213_v45 = vmax.f32 %v175_v43, 0.0  ;;  %v706_v46 = vpop.f32.mrb[2].mxu0 }
  0xdc   :  { %v190_v47 = vadd.f32 %v706_v46, %v61_v39  ;;  %v184_v48 = vpop.f32.mrb[3].mxu0  ;;  %v286_v39 = vpop.permute.xlu0 %285 }
  0xdd   :  { %v185_v50 = vadd.f32 %v184_v48, %v56_v37  ;;  %v788_v51 = vpack.c.bf16 %v214_v44, %v213_v45 }
  0xde   :  { %v216_v53 = vmax.f32 %v190_v47, 0.0 }
  0xdf   :  { %v215_v54 = vmax.f32 %v185_v50, 0.0  ;;  %v709_v55 = vpop.f32.mrb[4].mxu0  ;;  %789 = vmatprep.subr.bf16.mxu1 %v788_v51 }
  0xe0   :  { %v200_v56 = vadd.f32 %v709_v55, %v71_v49  ;;  %v194_v57 = vpop.f32.mrb[5].mxu0  ;;  %791 = vmatpush3.bf16.msra.mxu1 %v788_v51  ;;  %v301_v49 = vpop.permute.xlu1 %300 }
  0xe1   :  { %v792_v58 = vpack.c.bf16 %v216_v53, %v215_v54  ;;  %v195_v59 = vadd.f32 %v194_v57, %v66_v52  ;;  %v296_v52 = vpop.permute.xlu0 %295 }
  0xe2   :  { %v218_v60 = vmax.f32 %v200_v56, 0.0 }
  0xe3   :  { %v217_v62 = vmax.f32 %v195_v59, 0.0  ;;  %v712_v63 = vpop.f32.mrb[6].mxu0  ;;  %793 = vmatprep.subr.bf16.mxu1 %v792_v58 }
  0xe4   :  { %v210_v1 = vadd.f32 %v712_v63, %v81_v61  ;;  %v204_v2 = vpop.f32.mrb[7].mxu0  ;;  %795 = vmatpush3.bf16.msra.mxu1 %v792_v58  ;;  %v311_v61 = vpop.permute.xlu1 %310 }
  0xe5   :  { %v796_v3 = vpack.c.bf16 %v218_v60, %v217_v62  ;;  %v205_v4 = vadd.f32 %v204_v2, %v76_v0  ;;  %v306_v0 = vpop.permute.xlu0 %305 }
  0xe6   :  { %v220_v5 = vmax.f32 %v210_v1, 0.0 }
  0xe7   :  { %v219_v6 = vmax.f32 %v205_v4, 0.0  ;;  %797 = vmatprep.subr.bf16.mxu1 %v796_v3 }
  0xe8   :  { %799 = vmatpush3.bf16.msra.mxu1 %v796_v3 }
  0xe9   :  { %v800_v7 = vpack.c.bf16 %v220_v5, %v219_v6 }
  0xeb   :  { %801 = vmatprep.subr.bf16.mxu1 %v800_v7 }
  0xec   :  { %803 = vmatpush3.bf16.msra.mxu1 %v800_v7 }
  0xef   :  { %730 = vmatmul.mubr.msk.f32.vlgmr.msra.gmra.mrb[0].mxu1 %vm333_vm1, %v222_v8 }
  0xf0   :  { %732 = vmatprep.mubr.msk.f32.mxu1 %vm333_vm1, %v223_v9 }
  0xf3   :  { %733 = vmatmul.mubr.msk.f32.gmra.mrb[2].mxu1 %vm333_vm1, %v224_v10  ;;  %v321_v10 = vpop.permute.xlu1 %320 }
  0xf4   :  { %735 = vmatprep.mubr.msk.f32.mxu1 %vm333_vm1, %v225_v11 }
  0xf7   :  { %736 = vmatmul.mubr.msk.f32.gmra.mrb[4].mxu1 %vm333_vm1, %v226_v12 }
  0xf8   :  { %738 = vmatprep.mubr.msk.f32.mxu1 %vm333_vm1, %v227_v13  ;;  %v316_v13 = vpop.permute.xlu0 %315 }
  0xfb   :  { %739 = vmatmul.mubr.msk.f32.gmra.mrb[6].mxu1 %vm333_vm1, %v228_v14 }
  0xfc   :  { %741 = vmatprep.mubr.msk.f32.mxu1 %vm333_vm1, %v229_v15 }
  0xff   :  { %742 = vmatmul.mubr.msk.f32.gmra.mrb[8].mxu1 %vm333_vm1, %v230_v16 }
 0x100   :  { %744 = vmatprep.mubr.msk.f32.mxu1 %vm333_vm1, %v231_v17 }
 0x103   :  { %745 = vmatmul.mubr.msk.f32.gmra.mrb[10].mxu1 %vm333_vm1, %v232_v18 }
 0x104   :  { %747 = vmatprep.mubr.msk.f32.mxu1 %vm333_vm1, %v233_v19 }
 0x107   :  { %748 = vmatmul.mubr.msk.f32.gmra.mrb[12].mxu1 %vm333_vm1, %v234_v20 }
 0x108   :  { %750 = vmatprep.mubr.msk.f32.mxu1 %vm333_vm1, %v235_v21 }
 0x10b   :  { %751 = vmatmul.mubr.msk.f32.gmra.mrb[14].mxu1 %vm333_vm1, %v236_v22  ;;  %v331_v22 = vpop.permute.xlu1 %330 }
 0x1c2   :  { %v731_v31 = vpop.f32.mrb[0].mxu1 }
 0x1c3   :  { %v454_v32 = vadd.f32 %v731_v31, %v261_v25  ;;  %v448_v33 = vpop.f32.mrb[1].mxu1 }
 0x1c4   :  { %v449_v34 = vadd.f32 %v448_v33, %v256_v26  ;;  %v326_v26 = vpop.permute.xlu0 %325 }
 0x1c5   :  { %v528_v35 = vmax.f32 %v454_v32, 0.0 }
 0x1c6   :  { %v527_v37 = vmax.f32 %v449_v34, 0.0  ;;  %v734_v38 = vpop.f32.mrb[2].mxu1  ;;  %v543_v34 = vld [vmem:[%s1072_s5] sm:$0xff] }
 0x1c7   :  { %v464_v40 = vadd.f32 %v734_v38, %v271_v27  ;;  %v458_v41 = vpop.f32.mrb[3].mxu1 }
 0x1c8   :  { %v805_v42 = vpack.c.bf16 %v528_v35, %v527_v37  ;;  %v459_v43 = vadd.f32 %v458_v41, %v266_v28  ;;  %v548_v35 = vpop.permute.xlu0 %547 }
 0x1c9   :  { %v530_v44 = vmax.f32 %v464_v40, 0.0 }
 0x1ca   :  { %v529_v45 = vmax.f32 %v459_v43, 0.0  ;;  %v737_v46 = vpop.f32.mrb[4].mxu1  ;;  %806 = vmatpush3.bf16.msra.mxu0 %v805_v42 }
 0x1cb   :  { %v474_v47 = vadd.f32 %v737_v46, %v281_v29  ;;  %v468_v48 = vpop.f32.mrb[5].mxu1  ;;  %807 = vmatprep.subr.bf16.mxu0 %v835_v23 }
 0x1cc   :  { %v808_v50 = vpack.c.bf16 %v530_v44, %v529_v45  ;;  %v469_v51 = vadd.f32 %v468_v48, %v276_v30 }
 0x1cd   :  { %v532_v53 = vmax.f32 %v474_v47, 0.0 }
 0x1ce   :  { %v531_v54 = vmax.f32 %v469_v51, 0.0  ;;  %v740_v55 = vpop.f32.mrb[6].mxu1  ;;  %809 = vmatpush3.bf16.msra.mxu0 %v808_v50 }
 0x1cf   :  { %v484_v56 = vadd.f32 %v740_v55, %v291_v36  ;;  %v478_v57 = vpop.f32.mrb[7].mxu1  ;;  %810 = vmatprep.subr.bf16.mxu0 %v835_v23 }
 0x1d0   :  { %v811_v58 = vpack.c.bf16 %v532_v53, %v531_v54  ;;  %v479_v59 = vadd.f32 %v478_v57, %v286_v39 }
 0x1d1   :  { %v534_v60 = vmax.f32 %v484_v56, 0.0 }
 0x1d2   :  { %v533_v62 = vmax.f32 %v479_v59, 0.0  ;;  %v743_v63 = vpop.f32.mrb[8].mxu1  ;;  %812 = vmatpush3.bf16.msra.mxu0 %v811_v58 }
 0x1d3   :  { %v494_v1 = vadd.f32 %v743_v63, %v301_v49  ;;  %v488_v2 = vpop.f32.mrb[9].mxu1  ;;  %813 = vmatprep.subr.bf16.mxu0 %v835_v23 }
 0x1d4   :  { %v814_v3 = vpack.c.bf16 %v534_v60, %v533_v62  ;;  %v489_v4 = vadd.f32 %v488_v2, %v296_v52 }
 0x1d5   :  { %v536_v5 = vmax.f32 %v494_v1, 0.0 }
 0x1d6   :  { %v535_v6 = vmax.f32 %v489_v4, 0.0  ;;  %v746_v7 = vpop.f32.mrb[10].mxu1  ;;  %815 = vmatpush3.bf16.msra.mxu0 %v814_v3 }
 0x1d7   :  { %v504_v8 = vadd.f32 %v746_v7, %v311_v61  ;;  %v498_v9 = vpop.f32.mrb[11].mxu1  ;;  %816 = vmatprep.subr.bf16.mxu0 %v835_v23 }
 0x1d8   :  { %v817_v11 = vpack.c.bf16 %v536_v5, %v535_v6  ;;  %v499_v12 = vadd.f32 %v498_v9, %v306_v0 }
 0x1d9   :  { %v538_v14 = vmax.f32 %v504_v8, 0.0 }
 0x1da   :  { %v537_v15 = vmax.f32 %v499_v12, 0.0  ;;  %v749_v16 = vpop.f32.mrb[12].mxu1  ;;  %818 = vmatpush3.bf16.msra.mxu0 %v817_v11 }
 0x1db   :  { %v514_v17 = vadd.f32 %v749_v16, %v321_v10  ;;  %v508_v18 = vpop.f32.mrb[13].mxu1  ;;  %819 = vmatprep.subr.bf16.mxu0 %v835_v23 }
 0x1dc   :  { %v820_v19 = vpack.c.bf16 %v538_v14, %v537_v15  ;;  %v509_v20 = vadd.f32 %v508_v18, %v316_v13 }
 0x1dd   :  { %v540_v21 = vmax.f32 %v514_v17, 0.0 }
 0x1de   :  { %v539_v24 = vmax.f32 %v509_v20, 0.0  ;;  %v752_v25 = vpop.f32.mrb[14].mxu1  ;;  %821 = vmatpush3.bf16.msra.mxu0 %v820_v19 }
 0x1df   :  { %v524_v27 = vadd.f32 %v752_v25, %v331_v22  ;;  %v518_v28 = vpop.f32.mrb[15].mxu1  ;;  %822 = vmatprep.subr.bf16.mxu0 %v835_v23 }
 0x1e0   :  { %v823_v29 = vpack.c.bf16 %v540_v21, %v539_v24  ;;  %v519_v30 = vadd.f32 %v518_v28, %v326_v26 }
 0x1e1   :  { %v542_v31 = vmax.f32 %v524_v27, 0.0 }
 0x1e2   :  { %v541_v32 = vmax.f32 %v519_v30, 0.0  ;;  %824 = vmatpush3.bf16.msra.mxu0 %v823_v29 }
 0x1e3   :  { %825 = vmatprep.subr.bf16.mxu0 %v835_v23 }
 0x1e4   :  { %v826_v33 = vpack.c.bf16 %v542_v31, %v541_v32 }
 0x1e6   :  { %827 = vmatpush3.bf16.msra.mxu0 %v826_v33 }
 0x1e9   :  { %786 = vmatmul.mubr.f32.vlgmr.msra.gmra.mrb[8].mxu0 %v543_v34 }
 0x2bc   :  { %v616_v36 = vpop.f32.mrb[8].mxu0 }
 0x2bd   :  { %v617_v37 = vadd.f32 %v616_v36, %v548_v35  ;;  %v787_v38 = vpop.f32.mrb[9].mxu0 }
 0x2bf   :  { %620 = vst [vmem:[%s1073_s7] sm:$0xff] %v617_v37 }

</bundles_post_ra>
